<compile_context>
chip_gen: v7x
topology: tpu7x:2x2x1
jax: 0.10.0
libtpu: 0.0.40
codegen_flags: <defaults>
</compile_context>

<pallas_src>
import functools

import jax
import jax.numpy as jnp
from jax.experimental import pallas as pl
from jax.experimental.pallas import tpu as pltpu

HIDDEN = 128
SUBLANE = 8      # f32 sublane tile
TB_MAX = 1024    # batch-tile cap (amortizes ~0.35us/step grid overhead)


def _round_up(n, m):
    return ((n + m - 1) // m) * m


def _ac_net_kernel(x_ref, w1_ref, b1_ref, w2_ref, b2_ref, wh_ref, bh_ref,
                   out_ref, *, n_actions):
    x = x_ref[...]

    # shared trunk: ReLU(Linear) -> ReLU(Linear), f32 accumulation on the MXU
    h1 = jnp.dot(x, w1_ref[...], preferred_element_type=jnp.float32) + b1_ref[...]
    h1 = jnp.maximum(h1, 0.0)
    h2 = jnp.dot(h1, w2_ref[...], preferred_element_type=jnp.float32) + b2_ref[...]
    h2 = jnp.maximum(h2, 0.0)

    # fused heads: lanes [0, n_actions) = actor logits, lane n_actions = critic
    # value, remaining (padded) lanes are don't-care.
    heads = jnp.dot(h2, wh_ref[...], preferred_element_type=jnp.float32) + bh_ref[...]

    lane = jax.lax.broadcasted_iota(jnp.int32, heads.shape, dimension=1)
    is_action = lane < n_actions
    is_value = lane == n_actions

    # softmax over the real action lanes only (padded lanes masked to -inf)
    logits = jnp.where(is_action, heads, -jnp.inf)
    m = jnp.max(logits, axis=-1, keepdims=True)
    e = jnp.exp(logits - m)                       # exp(-inf) = 0 on padded lanes
    probs = e / jnp.sum(e, axis=-1, keepdims=True)

    # narrow (tb, out_lanes) store: probs | value | zeros
    out = jnp.where(is_action, probs, jnp.where(is_value, heads, 0.0))
    out_ref[...] = out.astype(out_ref.dtype)


def pack_params(params):
    """One-time packing (call outside the per-step jitted forward).

    Fuses actor (128 -> n_actions) and critic (128 -> 1) weights into one
    narrow (128, round_up(n_actions+1, 8)) head matmul.
    """
    n_actions = params["wa"].shape[1]
    assert n_actions >= 1, "n_actions must be >= 1 (softmax over empty set is NaN)"
    out_lanes = _round_up(n_actions + 1, SUBLANE)

    wh = jnp.zeros((HIDDEN, out_lanes), jnp.float32)
    wh = wh.at[:, :n_actions].set(params["wa"])
    wh = wh.at[:, n_actions:n_actions + 1].set(params["wc"])
    bh = jnp.zeros((1, out_lanes), jnp.float32)
    bh = bh.at[:, :n_actions].set(params["ba"])
    bh = bh.at[:, n_actions:n_actions + 1].set(params["bc"])

    return {"w1": params["w1"], "b1": params["b1"],
            "w2": params["w2"], "b2": params["b2"],
            "wh": wh, "bh": bh}


def actor_critic_forward(x, p, n_actions):
    """x: (B, input_dim) f32.  p: packed params (pack_params).  n_actions: static int.

    Returns (probs (B, n_actions), value (B, 1)) matching the PyTorch module.
    """
    B, input_dim = x.shape
    out_lanes = p["wh"].shape[1]
    assert n_actions + 1 <= out_lanes

    # --- batch tiling derived from B: <8 padded rows per step, tb <= TB_MAX ---
    b8 = _round_up(B, SUBLANE)
    n_steps = pl.cdiv(b8, TB_MAX)
    if n_steps > 1 and n_steps % 2 == 1:
        n_steps += 1                      # even step count -> both v7x TCs busy
    tb = _round_up(pl.cdiv(b8, n_steps), SUBLANE)
    b_pad = tb * n_steps

    x_p = x if b_pad == B else jnp.zeros((b_pad, input_dim), x.dtype).at[:B, :].set(x)

    kernel = functools.partial(_ac_net_kernel, n_actions=n_actions)

    def resident(shape):                   # weights stay VMEM-resident per step
        return pl.BlockSpec(shape, lambda i: (0, 0))

    out = pl.pallas_call(
        kernel,
        out_shape=jax.ShapeDtypeStruct((b_pad, out_lanes), jnp.float32),
        grid=(n_steps,),
        in_specs=[
            # x: last block dim == full input_dim (legal, no 128-lane padding)
            pl.BlockSpec((tb, input_dim), lambda i: (i, 0)),
            resident(p["w1"].shape),
            resident(p["b1"].shape),
            resident(p["w2"].shape),
            resident(p["b2"].shape),
            resident(p["wh"].shape),
            resident(p["bh"].shape),
        ],
        out_specs=pl.BlockSpec((tb, out_lanes), lambda i: (i, 0)),
        compiler_params=pltpu.CompilerParams(
            dimension_semantics=("parallel",)),     # batch axis shards across TCs
    )(x_p, p["w1"], p["b1"], p["w2"], p["b2"], p["wh"], p["bh"])

    probs = out[:B, :n_actions]
    value = out[:B, n_actions:n_actions + 1]
    return probs, value


def init_params(key, input_dim, n_actions, hidden=HIDDEN):
    """Deterministic synthetic init (PyTorch-style uniform fan-in bound).

    Weights stored transposed vs. PyTorch, i.e. (in_features, out_features),
    so the kernel computes y = x @ W + b directly on the MXU.
    """
    ks = jax.random.split(key, 8)

    def lin(kw, kb, fan_in, fan_out):
        bound = 1.0 / jnp.sqrt(jnp.float32(fan_in))
        w = jax.random.uniform(kw, (fan_in, fan_out), jnp.float32, -bound, bound)
        b = jax.random.uniform(kb, (1, fan_out), jnp.float32, -bound, bound)
        return w, b

    w1, b1 = lin(ks[0], ks[1], input_dim, hidden)
    w2, b2 = lin(ks[2], ks[3], hidden, hidden)
    wa, ba = lin(ks[4], ks[5], hidden, n_actions)
    wc, bc = lin(ks[6], ks[7], hidden, 1)
    return {"w1": w1, "b1": b1, "w2": w2, "b2": b2,
            "wa": wa, "ba": ba, "wc": wc, "bc": bc}


def reference_forward(x, p):
    h1 = jnp.maximum(x @ p["w1"] + p["b1"], 0.0)
    h2 = jnp.maximum(h1 @ p["w2"] + p["b2"], 0.0)
    logits = h2 @ p["wa"] + p["ba"]
    probs = jax.nn.softmax(logits, axis=-1)
    value = h2 @ p["wc"] + p["bc"]
    return probs, value


if __name__ == "__main__":
    B, INPUT_DIM, N_ACTIONS = 2, 16, 4

    key = jax.random.PRNGKey(0)
    kx, kp = jax.random.split(key)
    x = jax.random.normal(kx, (B, INPUT_DIM), jnp.float32)
    params = init_params(kp, INPUT_DIM, N_ACTIONS)

    # pack/fuse weights ONCE (outside the per-call path), then jit the forward
    packed = jax.device_put(pack_params(params))
    forward = jax.jit(actor_critic_forward, static_argnums=2)

    probs, value = forward(x, packed, N_ACTIONS)
    jax.block_until_ready((probs, value))

    # sanity check against pure-JAX reference
    ref_probs, ref_value = reference_forward(x, params)
    assert probs.shape == (B, N_ACTIONS) and value.shape == (B, 1)
    assert jnp.allclose(probs, ref_probs, atol=1e-5, rtol=1e-5)
    assert jnp.allclose(value, ref_value, atol=1e-5, rtol=1e-5)
    assert jnp.allclose(jnp.sum(probs, axis=-1), 1.0, atol=1e-5)

    print("KERNEL_OK")
</pallas_src>

<mosaic_0001>
module attributes {stable_mosaic.version = 11 : i64} {
  func.func @_ac_net_kernel(%arg0: i32, %arg1: memref<8x16xf32, #tpu.memory_space<vmem>>, %arg2: memref<16x128xf32, #tpu.memory_space<vmem>>, %arg3: memref<1x128xf32, #tpu.memory_space<vmem>>, %arg4: memref<128x128xf32, #tpu.memory_space<vmem>>, %arg5: memref<1x128xf32, #tpu.memory_space<vmem>>, %arg6: memref<128x8xf32, #tpu.memory_space<vmem>>, %arg7: memref<1x8xf32, #tpu.memory_space<vmem>>, %arg8: memref<8x8xf32, #tpu.memory_space<vmem>>) attributes {dimension_semantics = [#tpu.dimension_semantics<parallel>], iteration_bounds = array<i64: 1>, scalar_prefetch = 0 : i64, scratch_operands = 0 : i64, tpu.core_type = #tpu.core_type<tc>, window_params = [{transform_indices = @transform_0, window_bounds = array<i64: 8, 16>}, {pipeline_mode = #tpu.pipeline_mode<synchronous>, transform_indices = @transform_1, window_bounds = array<i64: 16, 128>}, {pipeline_mode = #tpu.pipeline_mode<synchronous>, transform_indices = @transform_2, window_bounds = array<i64: 1, 128>}, {pipeline_mode = #tpu.pipeline_mode<synchronous>, transform_indices = @transform_3, window_bounds = array<i64: 128, 128>}, {pipeline_mode = #tpu.pipeline_mode<synchronous>, transform_indices = @transform_4, window_bounds = array<i64: 1, 128>}, {pipeline_mode = #tpu.pipeline_mode<synchronous>, transform_indices = @transform_5, window_bounds = array<i64: 128, 8>}, {pipeline_mode = #tpu.pipeline_mode<synchronous>, transform_indices = @transform_6, window_bounds = array<i64: 1, 8>}, {transform_indices = @transform_7, window_bounds = array<i64: 8, 8>}]} {
    %c0 = arith.constant 0 : index
    %c0_0 = arith.constant 0 : index
    %0 = vector.load %arg1[%c0, %c0_0] : memref<8x16xf32, #tpu.memory_space<vmem>>, vector<8x16xf32>
    %c0_1 = arith.constant 0 : index
    %c0_2 = arith.constant 0 : index
    %1 = vector.load %arg2[%c0_1, %c0_2] : memref<16x128xf32, #tpu.memory_space<vmem>>, vector<16x128xf32>
    %cst = arith.constant dense<0.000000e+00> : vector<8x128xf32>
    %2 = tpu.matmul %0, %1, %cst {dimension_numbers = #tpu.dot_dimension_numbers<[1], [0], [0], [1], [0, 0, 1, 1], [], []>} : vector<8x16xf32>, vector<16x128xf32>, vector<8x128xf32> -> vector<8x128xf32>
    %c0_3 = arith.constant 0 : index
    %c0_4 = arith.constant 0 : index
    %3 = vector.load %arg3[%c0_3, %c0_4] : memref<1x128xf32, #tpu.memory_space<vmem>>, vector<1x128xf32>
    %4 = vector.broadcast %3 : vector<1x128xf32> to vector<8x128xf32>
    %5 = arith.addf %2, %4 : vector<8x128xf32>
    %cst_5 = arith.constant 0.000000e+00 : f32
    %6 = vector.broadcast %cst_5 : f32 to vector<8x128xf32>
    %7 = arith.maximumf %5, %6 : vector<8x128xf32>
    %c0_6 = arith.constant 0 : index
    %c0_7 = arith.constant 0 : index
    %8 = vector.load %arg4[%c0_6, %c0_7] : memref<128x128xf32, #tpu.memory_space<vmem>>, vector<128x128xf32>
    %cst_8 = arith.constant dense<0.000000e+00> : vector<8x128xf32>
    %9 = tpu.matmul %7, %8, %cst_8 {dimension_numbers = #tpu.dot_dimension_numbers<[1], [0], [0], [1], [0, 0, 1, 1], [], []>} : vector<8x128xf32>, vector<128x128xf32>, vector<8x128xf32> -> vector<8x128xf32>
    %c0_9 = arith.constant 0 : index
    %c0_10 = arith.constant 0 : index
    %10 = vector.load %arg5[%c0_9, %c0_10] : memref<1x128xf32, #tpu.memory_space<vmem>>, vector<1x128xf32>
    %11 = vector.broadcast %10 : vector<1x128xf32> to vector<8x128xf32>
    %12 = arith.addf %9, %11 : vector<8x128xf32>
    %cst_11 = arith.constant 0.000000e+00 : f32
    %13 = vector.broadcast %cst_11 : f32 to vector<8x128xf32>
    %14 = arith.maximumf %12, %13 : vector<8x128xf32>
    %c0_12 = arith.constant 0 : index
    %c0_13 = arith.constant 0 : index
    %15 = vector.load %arg6[%c0_12, %c0_13] : memref<128x8xf32, #tpu.memory_space<vmem>>, vector<128x8xf32>
    %cst_14 = arith.constant dense<0.000000e+00> : vector<8x8xf32>
    %16 = tpu.matmul %14, %15, %cst_14 {dimension_numbers = #tpu.dot_dimension_numbers<[1], [0], [0], [1], [0, 0, 1, 1], [], []>} : vector<8x128xf32>, vector<128x8xf32>, vector<8x8xf32> -> vector<8x8xf32>
    %c0_15 = arith.constant 0 : index
    %c0_16 = arith.constant 0 : index
    %17 = vector.load %arg7[%c0_15, %c0_16] : memref<1x8xf32, #tpu.memory_space<vmem>>, vector<1x8xf32>
    %18 = vector.broadcast %17 : vector<1x8xf32> to vector<8x8xf32>
    %19 = arith.addf %16, %18 : vector<8x8xf32>
    %20 = tpu.iota {dimensions = array<i32: 1>} : vector<8x8xi32>
    %c4_i32 = arith.constant 4 : i32
    %21 = vector.broadcast %c4_i32 : i32 to vector<8x8xi32>
    %22 = arith.cmpi slt, %20, %21 : vector<8x8xi32>
    %c4_i32_17 = arith.constant 4 : i32
    %23 = vector.broadcast %c4_i32_17 : i32 to vector<8x8xi32>
    %24 = arith.cmpi eq, %20, %23 : vector<8x8xi32>
    %cst_18 = arith.constant 0xFF800000 : f32
    %25 = vector.broadcast %cst_18 : f32 to vector<8x8xf32>
    %26 = arith.select %22, %19, %25 : vector<8x8xi1>, vector<8x8xf32>
    %cst_19 = arith.constant dense<0xFF800000> : vector<8xf32>
    %27 = vector.multi_reduction <maximumf>, %26, %cst_19 [1] : vector<8x8xf32> to vector<8xf32>
    %28 = vector.shape_cast %27 : vector<8xf32> to vector<8x1xf32>
    %29 = vector.broadcast %28 : vector<8x1xf32> to vector<8x8xf32>
    %30 = arith.subf %26, %29 : vector<8x8xf32>
    %31 = math.exp %30 : vector<8x8xf32>
    %cst_20 = arith.constant dense<0.000000e+00> : vector<8xf32>
    %32 = vector.multi_reduction <add>, %31, %cst_20 [1] : vector<8x8xf32> to vector<8xf32>
    %33 = vector.shape_cast %32 : vector<8xf32> to vector<8x1xf32>
    %34 = vector.broadcast %33 : vector<8x1xf32> to vector<8x8xf32>
    %35 = arith.divf %31, %34 : vector<8x8xf32>
    %cst_21 = arith.constant 0.000000e+00 : f32
    %36 = vector.broadcast %cst_21 : f32 to vector<8x8xf32>
    %37 = arith.select %24, %19, %36 : vector<8x8xi1>, vector<8x8xf32>
    %38 = arith.select %22, %35, %37 : vector<8x8xi1>, vector<8x8xf32>
    %c0_22 = arith.constant 0 : index
    %c0_23 = arith.constant 0 : index
    %39 = vector.load %arg8[%c0_22, %c0_23] : memref<8x8xf32, #tpu.memory_space<vmem>>, vector<8x8xf32>
    tpu.vector_store %arg8[%c0_22, %c0_23], %38 {strides = array<i32>} : memref<8x8xf32, #tpu.memory_space<vmem>>, vector<8x8xf32>,
    return
  }
  func.func @transform_0(%arg0: i32) -> (i32, i32) {
    %c0_i32 = arith.constant 0 : i32
    %c0_i32_0 = arith.constant 0 : i32
    return %arg0, %c0_i32 : i32, i32
  }
  func.func @transform_1(%arg0: i32) -> (i32, i32) {
    %c0_i32 = arith.constant 0 : i32
    %c0_i32_0 = arith.constant 0 : i32
    %c0_i32_1 = arith.constant 0 : i32
    return %c0_i32, %c0_i32_0 : i32, i32
  }
  func.func @transform_2(%arg0: i32) -> (i32, i32) {
    %c0_i32 = arith.constant 0 : i32
    %c0_i32_0 = arith.constant 0 : i32
    %c0_i32_1 = arith.constant 0 : i32
    return %c0_i32, %c0_i32_0 : i32, i32
  }
  func.func @transform_3(%arg0: i32) -> (i32, i32) {
    %c0_i32 = arith.constant 0 : i32
    %c0_i32_0 = arith.constant 0 : i32
    %c0_i32_1 = arith.constant 0 : i32
    return %c0_i32, %c0_i32_0 : i32, i32
  }
  func.func @transform_4(%arg0: i32) -> (i32, i32) {
    %c0_i32 = arith.constant 0 : i32
    %c0_i32_0 = arith.constant 0 : i32
    %c0_i32_1 = arith.constant 0 : i32
    return %c0_i32, %c0_i32_0 : i32, i32
  }
  func.func @transform_5(%arg0: i32) -> (i32, i32) {
    %c0_i32 = arith.constant 0 : i32
    %c0_i32_0 = arith.constant 0 : i32
    %c0_i32_1 = arith.constant 0 : i32
    return %c0_i32, %c0_i32_0 : i32, i32
  }
  func.func @transform_6(%arg0: i32) -> (i32, i32) {
    %c0_i32 = arith.constant 0 : i32
    %c0_i32_0 = arith.constant 0 : i32
    %c0_i32_1 = arith.constant 0 : i32
    return %c0_i32, %c0_i32_0 : i32, i32
  }
  func.func @transform_7(%arg0: i32) -> (i32, i32) {
    %c0_i32 = arith.constant 0 : i32
    %c0_i32_0 = arith.constant 0 : i32
    return %arg0, %c0_i32 : i32, i32
  }
}

</mosaic_0001>

<bundles_post_ra>
// kernel: actor_critic_forward.1
= control target key start
LH: loop header
LB: loop body
LE: loop exit
PB: predicated region body
PF: predicated region fallthrough
CT: control target
= control target key end

     0   :  { %v498_v0 = vmov 0.0|0.0   ;;  %vm499_vm0 = vmmov 0   ;;  %v500_v3 = vmov 0.0   ;;  %vm36_vm1 = vcmask 130048   ;;  %s683_s1 = inlined_call_operand.vmem [shape: f32[16,128], index: 1, kind: input, shape index: {}]   ;;  %s684_s3 = inlined_call_operand.vmem [shape: f32[128,128], index: 3, kind: input, shape index: {}]   ;;  %s685_s0 = inlined_call_operand.vmem [shape: f32[8,16], index: 0, kind: input, shape index: {}]   ;;  %s686_s5 = inlined_call_operand.vmem [shape: f32[128,8], index: 5, kind: input, shape index: {}]   ;;  %s687_s2 = inlined_call_operand.vmem [shape: f32[1,128], index: 2, kind: input, shape index: {}]   ;;  %s688_s4 = inlined_call_operand.vmem [shape: f32[1,128], index: 4, kind: input, shape index: {}]   ;;  %s689_s6 = inlined_call_operand.vmem [shape: f32[1,8], index: 6, kind: input, shape index: {}]   ;;  %s690_s7 = inlined_call_operand.vmem [shape: f32[8,8], index: 7, kind: output, shape index: {}]  }
   0x1   :  { %440 = vmatprep.subr.bf16.mxu0 %v498_v0  ;;  %v27_v1 = vld [vmem:[%s683_s1] sm:$0xff]  ;;  %v28_v2 = vld [vmem:[%s683_s1 + $0x8] sm:$0xff]  ;;  %367 = vmatprep.mubr.msk.f32.mxu0 %vm499_vm0, %v500_v3  ;;  %v113_v7 = vld [vmem:[%s684_s3 + $0x10] sm:$0xff]  ;;  %vm303_vm4 = vcmask 64512  }
   0x2   :  { %v441_v4 = vpack.c.bf16 %v28_v2, %v27_v1  ;;  %443 = vmatprep.subr.bf16.mxu1 %v498_v0  ;;  %v111_v5 = vld [vmem:[%s684_s3] sm:$0xff]  ;;  %v112_v6 = vld [vmem:[%s684_s3 + $0x8] sm:$0xff]  ;;  %402 = vmatprep.mubr.msk.f32.mxu1 %vm499_vm0, %v500_v3  ;;  %v114_v9 = vld [vmem:[%s684_s3 + $0x18] sm:$0xff] }
   0x3   :  { %v444_v8 = vpack.c.bf16 %v112_v6, %v111_v5  ;;  %v26_v10 = vld [vmem:[%s685_s0] sm:$0xff]  ;;  %v447_v11 = vpack.c.bf16 %v114_v9, %v113_v7  ;;  %v116_v13 = vld [vmem:[%s684_s3 + $0x28] sm:$0xff]  ;;  %v117_v15 = vld [vmem:[%s684_s3 + $0x30] sm:$0xff] }
   0x4   :  { %442 = vmatpush3.bf16.msra.mxu0 %v441_v4  ;;  %v115_v12 = vld [vmem:[%s684_s3 + $0x20] sm:$0xff]  ;;  %v118_v16 = vld [vmem:[%s684_s3 + $0x38] sm:$0xff]  ;;  %v120_v19 = vld [vmem:[%s684_s3 + $0x48] sm:$0xff] }
   0x5   :  { %445 = vmatpush3.bf16.msra.mxu1 %v444_v8  ;;  %467 = vmatprep.subr.bf16.mxu0 %v498_v0  ;;  %v450_v14 = vpack.c.bf16 %v116_v13, %v115_v12  ;;  %v453_v17 = vpack.c.bf16 %v118_v16, %v117_v15  ;;  %v119_v18 = vld [vmem:[%s684_s3 + $0x40] sm:$0xff]  ;;  %v121_v21 = vld [vmem:[%s684_s3 + $0x50] sm:$0xff]  ;;  %v122_v22 = vld [vmem:[%s684_s3 + $0x58] sm:$0xff] }
   0x6   :  { %446 = vmatprep.subr.bf16.mxu1 %v498_v0  ;;  %v456_v20 = vpack.c.bf16 %v120_v19, %v119_v18  ;;  %v459_v23 = vpack.c.bf16 %v122_v22, %v121_v21  ;;  %v123_v24 = vld [vmem:[%s684_s3 + $0x60] sm:$0xff]  ;;  %v124_v25 = vld [vmem:[%s684_s3 + $0x68] sm:$0xff]  ;;  %v125_v27 = vld [vmem:[%s684_s3 + $0x70] sm:$0xff] }
   0x7   :  { %368 = vmatmul.mubr.msk.f32.vlgmr.msra.gmra.mrb[0].mxu0 %vm36_vm1, %v26_v10  ;;  %v462_v26 = vpack.c.bf16 %v124_v25, %v123_v24  ;;  %v126_v28 = vld [vmem:[%s684_s3 + $0x78] sm:$0xff]  ;;  %v205_v30 = vld [vmem:[%s686_s5] sm:$0xff]  ;;  %v206_v31 = vld [vmem:[%s686_s5 + $0x8] sm:$0xff] }
   0x8   :  { %437 = vmatprep.mubr.msk.f32.mxu0 %vm499_vm0, %v500_v3  ;;  %v465_v29 = vpack.c.bf16 %v126_v28, %v125_v27  ;;  %v207_v32 = vld [vmem:[%s686_s5 + $0x10] sm:$0xff]  ;;  %v468_v33 = vpack.c.bf16 %v206_v31, %v205_v30  ;;  %v208_v34 = vld [vmem:[%s686_s5 + $0x18] sm:$0xff]  ;;  %v209_v36 = vld [vmem:[%s686_s5 + $0x20] sm:$0xff] }
   0x9   :  { %448 = vmatpush3.bf16.msra.mxu1 %v447_v11  ;;  %v471_v35 = vpack.c.bf16 %v208_v34, %v207_v32  ;;  %v210_v37 = vld [vmem:[%s686_s5 + $0x28] sm:$0xff]  ;;  %v211_v39 = vld [vmem:[%s686_s5 + $0x30] sm:$0xff]  ;;  %v212_v40 = vld [vmem:[%s686_s5 + $0x38] sm:$0xff] }
   0xa   :  { %449 = vmatprep.subr.bf16.mxu1 %v498_v0  ;;  %469 = vmatpush3.bf16.msra.mxu0 %v468_v33  ;;  %v474_v38 = vpack.c.bf16 %v210_v37, %v209_v36  ;;  %v477_v41 = vpack.c.bf16 %v212_v40, %v211_v39  ;;  %v213_v42 = vld [vmem:[%s686_s5 + $0x40] sm:$0xff]  ;;  %v214_v43 = vld [vmem:[%s686_s5 + $0x48] sm:$0xff]  ;;  %v215_v45 = vld [vmem:[%s686_s5 + $0x50] sm:$0xff] }
   0xb   :  { %470 = vmatprep.subr.bf16.mxu0 %v498_v0  ;;  %v480_v44 = vpack.c.bf16 %v214_v43, %v213_v42  ;;  %v216_v46 = vld [vmem:[%s686_s5 + $0x58] sm:$0xff]  ;;  %v217_v48 = vld [vmem:[%s686_s5 + $0x60] sm:$0xff]  ;;  %v218_v49 = vld [vmem:[%s686_s5 + $0x68] sm:$0xff] }
   0xc   :  { %v483_v47 = vpack.c.bf16 %v216_v46, %v215_v45  ;;  %v486_v50 = vpack.c.bf16 %v218_v49, %v217_v48  ;;  %v322_v51 = vld [vmem:[%s687_s2] ss:$0 sm:$0xff]  ;;  %v219_v56 = vld [vmem:[%s686_s5 + $0x70] sm:$0xff]  ;;  %v220_v57 = vld [vmem:[%s686_s5 + $0x78] sm:$0xff] }
   0xd   :  { %451 = vmatpush3.bf16.msra.mxu1 %v450_v14  ;;  %v489_v58 = vpack.c.bf16 %v220_v57, %v219_v56  ;;  %v324_v59 = vld [vmem:[%s688_s4] ss:$0 sm:$0xff] }
   0xe   :  { %452 = vmatprep.subr.bf16.mxu1 %v498_v0  ;;  %472 = vmatpush3.bf16.msra.mxu0 %v471_v35  ;;  %v325_v2 = vld [vmem:[%s689_s6] ss:$0 sm:$0xff] }
   0xf   :  { %473 = vmatprep.subr.bf16.mxu0 %v498_v0 }
  0x11   :  { %454 = vmatpush3.bf16.msra.mxu1 %v453_v17 }
  0x12   :  { %455 = vmatprep.subr.bf16.mxu1 %v498_v0  ;;  %475 = vmatpush3.bf16.msra.mxu0 %v474_v38 }
  0x13   :  { %476 = vmatprep.subr.bf16.mxu0 %v498_v0 }
  0x15   :  { %457 = vmatpush3.bf16.msra.mxu1 %v456_v20 }
  0x16   :  { %458 = vmatprep.subr.bf16.mxu1 %v498_v0  ;;  %478 = vmatpush3.bf16.msra.mxu0 %v477_v41 }
  0x17   :  { %479 = vmatprep.subr.bf16.mxu0 %v498_v0 }
  0x19   :  { %460 = vmatpush3.bf16.msra.mxu1 %v459_v23 }
  0x1a   :  { %461 = vmatprep.subr.bf16.mxu1 %v498_v0  ;;  %481 = vmatpush3.bf16.msra.mxu0 %v480_v44 }
  0x1b   :  { %482 = vmatprep.subr.bf16.mxu0 %v498_v0 }
  0x1d   :  { %463 = vmatpush3.bf16.msra.mxu1 %v462_v26 }
  0x1e   :  { %464 = vmatprep.subr.bf16.mxu1 %v498_v0  ;;  %484 = vmatpush3.bf16.msra.mxu0 %v483_v47 }
  0x1f   :  { %485 = vmatprep.subr.bf16.mxu0 %v498_v0 }
  0x21   :  { %466 = vmatpush3.bf16.msra.mxu1 %v465_v29 }
  0x22   :  { %487 = vmatpush3.bf16.msra.mxu0 %v486_v50 }
  0x23   :  { %488 = vmatprep.subr.bf16.mxu0 %v498_v0  ;;  %v298_v0 = vlaneseq }
  0x25   :  { %v299_v1 = vand.u32 127, %v298_v0 }
  0x26   :  { %490 = vmatpush3.bf16.msra.mxu0 %v489_v58 }
  0x27   :  { %vm301_vm2 = vcmp.eq.s32.totalorder %v299_v1, 4  ;;  %vm300_vm3 = vcmp.lt.s32.totalorder %v299_v1, 4 }
  0xda   :  { %v106_v52 = vpop.f32.mrb[0].mxu0 }
  0xdb   :  { %v107_v53 = vadd.f32 %v322_v51, %v106_v52  ;;  %v369_v54 = vpop.f32.mrb[1].mxu0 }
  0xdd   :  { %v110_v55 = vmax.f32 %v107_v53, 0.0 }
  0xdf   :  { %403 = vmatmul.mubr.f32.vlgmr.msra.gmra.mrb[0].mxu1 %v110_v55 }
 0x1b2   :  { %v200_v60 = vpop.f32.mrb[0].mxu1 }
 0x1b3   :  { %v201_v61 = vadd.f32 %v324_v59, %v200_v60  ;;  %v404_v62 = vpop.f32.mrb[1].mxu1 }
 0x1b5   :  { %v204_v63 = vmax.f32 %v201_v61, 0.0 }
 0x1b7   :  { %438 = vmatmul.mubr.f32.vlgmr.msra.gmra.mrb[2].mxu0 %v204_v63 }
 0x28a   :  { %v294_v3 = vpop.f32.mrb[2].mxu0 }
 0x28b   :  { %v295_v4 = vadd.f32 %v325_v2, %v294_v3  ;;  %v439_v5 = vpop.f32.mrb[3].mxu0 }
 0x28d   :  { %v315_v6 = vsel %vm301_vm2, %v295_v4, 0.0  ;;  %v302_v7 = vsel %vm300_vm3, %v295_v4, -inf }
 0x28e   :  { %v304_v8 = vsel %vm303_vm4, %v302_v7, -inf }
 0x28f   :  { %305 = vmax.xlane.f32.xlu0 %v304_v8 }
 0x31c   :  { %v306_v9 = vpop.xlane.xlu0 %305 }
 0x31d   :  { %v307_v10 = vsub.f32 %v302_v7, %v306_v9 }
 0x31f   :  { %v308_v11 = vmul.f32 1.442695, %v307_v10 }
 0x321   :  { %494 = vpow2.f32 %v308_v11 }
 0x32b   :  { %v495_v12 = vpop.eup %494 }
 0x32c   :  { %v310_v13 = vsel %vm303_vm4, %v495_v12, 0.0 }
 0x32d   :  { %311 = vadd.xlane.f32.xlu0 %v310_v13 }
 0x3ba   :  { %v312_v14 = vpop.xlane.xlu0 %311 }
 0x3bb   :  { %496 = vrcp.f32 %v312_v14 }
 0x3c5   :  { %v497_v15 = vpop.eup %496 }
 0x3c6   :  { %v314_v16 = vmul.f32 %v497_v15, %v495_v12 }
 0x3c8   :  { %v316_v17 = vsel %vm300_vm3, %v314_v16, %v315_v6 }
 0x3c9   :  { %317 = vst.msk [vmem:[%s690_s7] sm:$0xff] %vm303_vm4, %v316_v17 }

</bundles_post_ra>
